<compile_context>
chip_gen: v5e
topology: v5e:2x2
jax: 0.10.0
libtpu: 0.0.40
codegen_flags: <defaults>
</compile_context>

<pallas_src>
import jax
import jax.numpy as jnp
from jax.experimental import pallas as pl
from jax.experimental.pallas import tpu as pltpu

_MIB = 1024 * 1024


def _pick_tile(requested, dim, multiple):
    """Largest tile <= requested that divides `dim` and is a multiple of
    `multiple`.  Falls back to the full dim (always a legal block)."""
    if dim <= multiple or dim % multiple != 0:
        return dim
    t = min(requested, dim)
    t -= t % multiple
    t = max(t, multiple)
    while dim % t != 0:
        t -= multiple
    return t


# ---------------------------------------------------------------------------
# Fused MLP + addmm kernel:  out = relu(v1 @ W1^T) @ W2^T + gram
# ---------------------------------------------------------------------------
def _fused_mlp_kernel(v1_ref, w1t_ref, w2t_ref, gram_ref, o_ref, acc_ref):
    h_step = pl.program_id(1)

    @pl.when(h_step == 0)
    def _():
        acc_ref[...] = jnp.zeros_like(acc_ref)

    # First matmul chunk: (tm, inp) @ (inp, th) -> (tm, th), f32 acc on MXU.
    a = v1_ref[...].astype(jnp.bfloat16)            # no-op if pre-cast bf16
    h = jnp.dot(a, w1t_ref[...], preferred_element_type=jnp.float32)
    h = jnp.maximum(h, 0.0).astype(jnp.bfloat16)    # relu epilogue, bf16 feed

    # Second matmul chunk consumed straight from VMEM (no HBM round-trip).
    acc_ref[...] += jnp.dot(h, w2t_ref[...],
                            preferred_element_type=jnp.float32)

    @pl.when(h_step == pl.num_programs(1) - 1)
    def _():
        o_ref[...] = (acc_ref[...]
                      + gram_ref[...].astype(jnp.float32)).astype(o_ref.dtype)


def _fused_forward(v1, w1t, w2t, gram, *, tm, th):
    M, inp = v1.shape
    inp_w, hidden = w1t.shape
    hidden_w, out = w2t.shape
    assert inp == inp_w and hidden == hidden_w
    assert gram.shape == (M, out)

    tm = _pick_tile(tm, M, 8)          # sublane multiple
    th = _pick_tile(th, hidden, 128)   # lane multiple (last dim of W1^T block)
    n_m, n_h = M // tm, hidden // th

    # Fold the f32->bf16 cast into the kernel only when v1 is streamed once;
    # otherwise pre-cast so repeated HBM reads of v1 move 2-byte elements.
    v1_in = v1 if n_h == 1 else v1.astype(jnp.bfloat16)
    v1_bytes = jnp.dtype(v1_in.dtype).itemsize

    # Double-buffered working-set estimate (+ headroom).
    working = (2 * (tm * inp * v1_bytes        # v1 row blocks
                    + inp * th * 2             # W1^T chunks (bf16)
                    + th * out * 2             # W2^T chunks (bf16)
                    + tm * out * 2)            # gram blocks (bf16)
               + 2 * tm * out * 4              # f32 output blocks
               + tm * out * 4                  # f32 accumulator scratch
               + tm * th * 4)                  # f32 h intermediate
    vmem_limit = int(min(96 * _MIB, max(32 * _MIB, 1.5 * working)))

    cost = pl.CostEstimate(
        flops=2 * M * inp * hidden + 2 * M * hidden * out,
        transcendentals=0,
        bytes_accessed=(M * inp * v1_bytes + inp * hidden * 2
                        + hidden * out * 2 + M * out * 2 + M * out * 4),
    )

    return pl.pallas_call(
        _fused_mlp_kernel,
        out_shape=jax.ShapeDtypeStruct((M, out), jnp.float32),
        grid_spec=pltpu.PrefetchScalarGridSpec(
            num_scalar_prefetch=0,
            grid=(n_m, n_h),
            in_specs=[
                pl.BlockSpec((tm, inp), lambda i, h: (i, 0)),    # v1 rows
                pl.BlockSpec((inp, th), lambda i, h: (0, h)),    # W1^T chunk
                pl.BlockSpec((th, out), lambda i, h: (h, 0)),    # W2^T chunk
                pl.BlockSpec((tm, out), lambda i, h: (i, 0)),    # gram (bf16)
            ],
            out_specs=pl.BlockSpec((tm, out), lambda i, h: (i, 0)),
            scratch_shapes=[pltpu.VMEM((tm, out), jnp.float32)],
        ),
        compiler_params=pltpu.CompilerParams(
            dimension_semantics=("parallel", "arbitrary"),
            vmem_limit_bytes=vmem_limit,
        ),
        cost_estimate=cost,
    )(v1_in, w1t, w2t, gram)


# ---------------------------------------------------------------------------
# Plain tiled matmul — used only ONCE (hoisted) to build the Gram matrix.
# ---------------------------------------------------------------------------
def _matmul_kernel(a_ref, b_ref, o_ref, acc_ref):
    @pl.when(pl.program_id(2) == 0)
    def _():
        acc_ref[...] = jnp.zeros_like(acc_ref)

    acc_ref[...] += jnp.dot(a_ref[...], b_ref[...],
                            preferred_element_type=jnp.float32)

    @pl.when(pl.program_id(2) == pl.num_programs(2) - 1)
    def _():
        o_ref[...] = acc_ref[...].astype(o_ref.dtype)


def _tiled_matmul(a, b, *, out_dtype, tm=512, tn=512, tk=512):
    M, K = a.shape
    K2, N = b.shape
    assert K == K2
    tm = _pick_tile(tm, M, 8)
    tn = _pick_tile(tn, N, 128)
    tk = _pick_tile(tk, K, 128)

    a_bytes = jnp.dtype(a.dtype).itemsize
    cost = pl.CostEstimate(
        flops=2 * M * N * K,
        transcendentals=0,
        bytes_accessed=(M * K + K * N) * a_bytes
                        + M * N * jnp.dtype(out_dtype).itemsize,
    )

    return pl.pallas_call(
        _matmul_kernel,
        out_shape=jax.ShapeDtypeStruct((M, N), out_dtype),
        grid_spec=pltpu.PrefetchScalarGridSpec(
            num_scalar_prefetch=0,
            grid=(M // tm, N // tn, K // tk),
            in_specs=[pl.BlockSpec((tm, tk), lambda i, j, k: (i, k)),
                      pl.BlockSpec((tk, tn), lambda i, j, k: (k, j))],
            out_specs=pl.BlockSpec((tm, tn), lambda i, j, k: (i, j)),
            scratch_shapes=[pltpu.VMEM((tm, tn), jnp.float32)],
        ),
        compiler_params=pltpu.CompilerParams(
            dimension_semantics=("parallel", "parallel", "arbitrary"),
            vmem_limit_bytes=64 * _MIB,
        ),
        cost_estimate=cost,
    )(a, b)


def make_layer1(w1, w2, *, tm=512, th=512):
    """Build Layer1.forward with weight-only work hoisted out of the hot path.

    w1: (hidden, inp) -- linear1.weight     w2: (out, hidden) -- linear2.weight
    Returns forward(v1, v2) -> (inp, inp) float32.
    """
    hidden, inp = w1.shape
    out, hidden_w = w2.shape
    assert hidden == hidden_w

    # Pre-transpose ONCE (all in-kernel matmuls are plain (M,K)@(K,N)) and
    # pre-cast to bf16 for the bf16-native MXUs.
    w1t = jnp.asarray(w1.T, dtype=jnp.bfloat16)     # (inp, hidden)
    w1b = jnp.asarray(w1, dtype=jnp.bfloat16)       # (hidden, inp)
    w2t = jnp.asarray(w2.T, dtype=jnp.bfloat16)     # (hidden, out)

    # Hoisted weight-only Gram matrix W1^T @ W1, cached in bf16 (re-expanded
    # to f32 inside the fused kernel's epilogue).
    gram = _tiled_matmul(w1t, w1b, out_dtype=jnp.bfloat16)   # (inp, inp)
    gram = jax.block_until_ready(gram)

    @jax.jit
    def forward(v1, v2):
        del v2  # TODO(synk): invalid `input2` kwarg in the torch reference.
        B, inp_v = v1.shape
        assert inp_v == inp
        # torch.addmm would broadcast the (B, out) result against the
        # (inp, inp) Gram matrix; only the exact-shape case is implemented.
        # TODO(synk): degenerate broadcasts (B == 1 or out == 1) unsupported.
        assert B == inp and out == inp
        return _fused_forward(v1, w1t, w2t, gram, tm=tm, th=th)

    return forward


def _reference_matched(v1, w1, w2):
    # Mirrors the kernel numerics: bf16 operands, f32 accumulation, bf16 gram.
    bf = lambda x: x.astype(jnp.bfloat16)
    h = jnp.maximum(jnp.dot(bf(v1), bf(w1).T,
                            preferred_element_type=jnp.float32), 0.0)
    y = jnp.dot(bf(h), bf(w2).T, preferred_element_type=jnp.float32)
    gram = jnp.dot(bf(w1).T, bf(w1),
                   preferred_element_type=jnp.float32).astype(jnp.bfloat16)
    return y + gram.astype(jnp.float32)


def _reference_f32(v1, w1, w2):
    h = jnp.maximum(v1 @ w1.T, 0.0)
    return h @ w2.T + w1.T @ w1


if __name__ == "__main__":
    # Small, lane-dense demo shapes; batch == inp == out so the addmm addend
    # shape matches the (inp, inp) Gram matrix exactly.
    INP, HIDDEN, OUT, BATCH = 128, 256, 128, 128

    key = jax.random.PRNGKey(0)
    k_v1, k_v2, k_w1, k_w2 = jax.random.split(key, 4)
    v1 = jax.random.normal(k_v1, (BATCH, INP), dtype=jnp.float32)
    v2 = jax.random.normal(k_v2, (BATCH, INP), dtype=jnp.float32)
    w1 = jax.random.uniform(k_w1, (HIDDEN, INP), dtype=jnp.float32,
                            minval=-1.0, maxval=1.0) / jnp.sqrt(INP)
    w2 = jax.random.uniform(k_w2, (OUT, HIDDEN), dtype=jnp.float32,
                            minval=-1.0, maxval=1.0) / jnp.sqrt(HIDDEN)

    ref_bf = _reference_matched(v1, w1, w2)
    ref_f32 = _reference_f32(v1, w1, w2)

    # Small tiles here purely to exercise the multi-step hidden grid and the
    # row-parallel axis (2x2 grid) in the demo; production keeps the 512
    # defaults (multiples of 256 for the v6e/v7x 2x256x256 MXUs).
    forward_tiled = make_layer1(w1, w2, tm=64, th=128)
    out_tiled = jax.block_until_ready(forward_tiled(v1, v2))

    # Default config: tiles clamp to the (small) full dims -> single-step,
    # fully weight-stationary grid exercising the in-kernel bf16 cast path.
    forward_ws = make_layer1(w1, w2)
    out_ws = jax.block_until_ready(forward_ws(v1, v2))

    for result in (out_tiled, out_ws):
        assert result.shape == (INP, INP)
        err_m = float(jnp.max(jnp.abs(result - ref_bf)))
        err_f = float(jnp.max(jnp.abs(result - ref_f32)))
        assert err_m < 2e-2, f"mismatch vs bf16-matched ref: {err_m}"
        assert err_f < 1.5e-1, f"mismatch vs f32 ref: {err_f}"

    print("KERNEL_OK")
</pallas_src>

<mosaic_0001>
module attributes {stable_mosaic.version = 11 : i64} {
  func.func @_matmul_kernel(%arg0: i32, %arg1: i32, %arg2: i32, %arg3: memref<128x256xbf16, #tpu.memory_space<vmem>>, %arg4: memref<256x128xbf16, #tpu.memory_space<vmem>>, %arg5: memref<128x128xbf16, #tpu.memory_space<vmem>>, %arg6: memref<128x128xf32, #tpu.memory_space<vmem>>) attributes {dimension_semantics = [#tpu.dimension_semantics<parallel>, #tpu.dimension_semantics<parallel>, #tpu.dimension_semantics<arbitrary>], iteration_bounds = array<i64: 1, 1, 1>, scalar_prefetch = 0 : i64, scratch_operands = 1 : i64, tpu.core_type = #tpu.core_type<tc>, window_params = [{transform_indices = @transform_0, window_bounds = array<i64: 128, 256>}, {transform_indices = @transform_1, window_bounds = array<i64: 256, 128>}, {transform_indices = @transform_2, window_bounds = array<i64: 128, 128>}]} {
    %c0_i32 = arith.constant 0 : i32
    %0 = arith.cmpi eq, %arg2, %c0_i32 : i32
    %1 = arith.extui %0 : i1 to i32
    %c0_i32_0 = arith.constant 0 : i32
    %2 = arith.cmpi ne, %1, %c0_i32_0 : i32
    scf.if %2 {
      %cst_10 = arith.constant 0.000000e+00 : f32
      %12 = vector.broadcast %cst_10 : f32 to vector<128x128xf32>
      %c0_11 = arith.constant 0 : index
      %c0_12 = arith.constant 0 : index
      %13 = vector.load %arg6[%c0_11, %c0_12] : memref<128x128xf32, #tpu.memory_space<vmem>>, vector<128x128xf32>
      tpu.vector_store %arg6[%c0_11, %c0_12], %12 {strides = array<i32>} : memref<128x128xf32, #tpu.memory_space<vmem>>, vector<128x128xf32>,
    } else {
    }
    %c0 = arith.constant 0 : index
    %c0_1 = arith.constant 0 : index
    %3 = vector.load %arg6[%c0, %c0_1] : memref<128x128xf32, #tpu.memory_space<vmem>>, vector<128x128xf32>
    %c0_2 = arith.constant 0 : index
    %c0_3 = arith.constant 0 : index
    %4 = vector.load %arg3[%c0_2, %c0_3] : memref<128x256xbf16, #tpu.memory_space<vmem>>, vector<128x256xbf16>
    %c0_4 = arith.constant 0 : index
    %c0_5 = arith.constant 0 : index
    %5 = vector.load %arg4[%c0_4, %c0_5] : memref<256x128xbf16, #tpu.memory_space<vmem>>, vector<256x128xbf16>
    %cst = arith.constant dense<0.000000e+00> : vector<128x128xf32>
    %6 = tpu.matmul %4, %5, %cst {dimension_numbers = #tpu.dot_dimension_numbers<[1], [0], [0], [1], [0, 0, 1, 1], [], []>} : vector<128x256xbf16>, vector<256x128xbf16>, vector<128x128xf32> -> vector<128x128xf32>
    %7 = arith.addf %3, %6 : vector<128x128xf32>
    %c0_6 = arith.constant 0 : index
    %c0_7 = arith.constant 0 : index
    %8 = vector.load %arg6[%c0_6, %c0_7] : memref<128x128xf32, #tpu.memory_space<vmem>>, vector<128x128xf32>
    tpu.vector_store %arg6[%c0_6, %c0_7], %7 {strides = array<i32>} : memref<128x128xf32, #tpu.memory_space<vmem>>, vector<128x128xf32>,
    %c0_i32_8 = arith.constant 0 : i32
    %9 = arith.cmpi eq, %arg2, %c0_i32_8 : i32
    %10 = arith.extui %9 : i1 to i32
    %c0_i32_9 = arith.constant 0 : i32
    %11 = arith.cmpi ne, %10, %c0_i32_9 : i32
    scf.if %11 {
      %c0_10 = arith.constant 0 : index
      %c0_11 = arith.constant 0 : index
      %12 = vector.load %arg6[%c0_10, %c0_11] : memref<128x128xf32, #tpu.memory_space<vmem>>, vector<128x128xf32>
      %13 = arith.truncf %12 : vector<128x128xf32> to vector<128x128xbf16>
      %c0_12 = arith.constant 0 : index
      %c0_13 = arith.constant 0 : index
      %14 = vector.load %arg5[%c0_12, %c0_13] : memref<128x128xbf16, #tpu.memory_space<vmem>>, vector<128x128xbf16>
      tpu.vector_store %arg5[%c0_12, %c0_13], %13 {strides = array<i32>} : memref<128x128xbf16, #tpu.memory_space<vmem>>, vector<128x128xbf16>,
    } else {
    }
    return
  }
  func.func @transform_0(%arg0: i32, %arg1: i32, %arg2: i32) -> (i32, i32) {
    %c0_i32 = arith.constant 0 : i32
    return %arg0, %arg2 : i32, i32
  }
  func.func @transform_1(%arg0: i32, %arg1: i32, %arg2: i32) -> (i32, i32) {
    %c0_i32 = arith.constant 0 : i32
    return %arg2, %arg1 : i32, i32
  }
  func.func @transform_2(%arg0: i32, %arg1: i32, %arg2: i32) -> (i32, i32) {
    %c0_i32 = arith.constant 0 : i32
    return %arg0, %arg1 : i32, i32
  }
}

</mosaic_0001>

<bundles_post_ra>
// kernel: tpu_custom_call.1
= control target key start
LH: loop header
LB: loop body
LE: loop exit
PB: predicated region body
PF: predicated region fallthrough
CT: control target
= control target key end

     0   :  { %7 = vsyncpa [#allocation4], 0  ;;  %s850_s0 = inlined_call_operand.hbm [shape: bf16[128,256], index: 0, kind: input, shape index: {}]   ;;  %s851_s1 = inlined_call_operand.hbm [shape: bf16[256,128], index: 1, kind: input, shape index: {}]   ;;  %s852_s2 = inlined_call_operand.hbm [shape: bf16[128,128], index: 2, kind: output, shape index: {}]  }
   0x1   :  { %8 = vsyncpa [#allocation7], 0 }
   0x2   :  { %9 = vsyncpa [#allocation5], 0  ;;  %s14_s11 = sshll.u32 %s850_s0, 4  ;;  %s813_s12 = smov [#allocation3]   ;;  %s15_s11 = int_to_ptr.hbm [resolvable:$true] %s14_s11 }
   0x3   :  { %s16_s13 = sshll.u32 %s813_s12, 4  ;;  %s27_s16 = sshll.u32 %s851_s1, 4  ;;  %s17_s13 = int_to_ptr.vmem [resolvable:$true] %s16_s13  ;;  %s28_s16 = int_to_ptr.hbm [resolvable:$true] %s27_s16 }
   0x4   :  { %s814_s17 = smov 128   ;;  %s815_s18 = smov 8  }
   0x5   :  { %22 = dma.hbm_to_vmem [thread:$0]  %s15_s11, 2048, %s17_s13, [#allocation4], %s814_s17, %s814_s17, %s815_s18  }
   0x6   :  { %s816_s19 = smov [#allocation6]   ;;  %s817_s21 = smov 64  }
   0x7   :  { %s29_s20 = sshll.u32 %s816_s19, 4  ;;  %s818_s22 = smov 4   ;;  %s30_s20 = int_to_ptr.vmem [resolvable:$true] %s29_s20 }
   0x8   :  { %35 = dma.hbm_to_vmem [thread:$0]  %s28_s16, 2048, %s30_s20, [#allocation7], %s817_s21, %s817_s21, %s818_s22  }
   0x9   :  { %807 = dma.done.wait [#allocation4], 2048  }
   0xa   :  { %808 = vsyncadd [#allocation4], 4294965248 }
   0xb   :  { %809 = dma.done.wait [#allocation7], 2048  }
   0xc   :  { %810 = vsyncadd [#allocation7], 4294965248  ;;  %v656_v0 = vld [vmem:[#allocation6 + $0x38] sm:$0xff]  ;;  %v655_v2 = vld [vmem:[#allocation6 + $0x30] sm:$0xff]  ;;  %s819_s0 = smov [#allocation8]   ;;  %s491_s25 = sshll.u32 %s852_s2, 4  ;;  %s492_s25 = int_to_ptr.hbm [resolvable:$true] %s491_s25 }
   0xd   :  { %v664_v1 = vld [vmem:[#allocation6 + $0x78] sm:$0xff]  ;;  %304 = vmatpush.bf16.msra.mxu0 %v656_v0  ;;  %712 = vmatpush.bf16.msra.mxu2 %v656_v0  ;;  %v663_v3 = vld [vmem:[#allocation6 + $0x70] sm:$0xff]  ;;  %v654_v4 = vld [vmem:[#allocation6 + $0x28] sm:$0xff]  ;;  %s489_s1 = sshll.u32 %s819_s0, 4  ;;  %s490_s1 = int_to_ptr.vmem [resolvable:$true] %s489_s1 }
   0xe   :  { %353 = vmatpush.bf16.msra.mxu1 %v664_v1  ;;  %720 = vmatpush.bf16.msra.mxu3 %v664_v1  ;;  %v662_v5 = vld [vmem:[#allocation6 + $0x68] sm:$0xff]  ;;  %v653_v6 = vld [vmem:[#allocation6 + $0x20] sm:$0xff]  ;;  %v652_v8 = vld [vmem:[#allocation6 + $0x18] sm:$0xff] }
   0xf   :  { %v661_v7 = vld [vmem:[#allocation6 + $0x60] sm:$0xff]  ;;  %v660_v9 = vld [vmem:[#allocation6 + $0x58] sm:$0xff]  ;;  %v651_v10 = vld [vmem:[#allocation6 + $0x10] sm:$0xff] }
  0x10   :  { %v659_v11 = vld [vmem:[#allocation6 + $0x50] sm:$0xff]  ;;  %v650_v12 = vld [vmem:[#allocation6 + $0x8] sm:$0xff]  ;;  %v649_v14 = vld [vmem:[#allocation6] sm:$0xff] }
  0x11   :  { %305 = vmatpush.bf16.msra.mxu0 %v655_v2  ;;  %713 = vmatpush.bf16.msra.mxu2 %v655_v2  ;;  %v658_v13 = vld [vmem:[#allocation6 + $0x48] sm:$0xff]  ;;  %v657_v15 = vld [vmem:[#allocation6 + $0x40] sm:$0xff]  ;;  %v515_v28 = vld [vmem:[#allocation3 + $0x10] sm:$0xf] }
  0x12   :  { %354 = vmatpush.bf16.msra.mxu1 %v663_v3  ;;  %721 = vmatpush.bf16.msra.mxu3 %v663_v3  ;;  %v507_v16 = vld [vmem:[#allocation3] sm:$0xf]  ;;  %v634_v17 = vld [vmem:[#allocation3 + $0x4] sm:$0xf0]  ;;  %v633_v20 = vld [vmem:[#allocation3 + $0x4] sm:$0xf] }
  0x13   :  { %v539_v18 = vld [vmem:[#allocation3 + $0x40] sm:$0xf]  ;;  %v642_v19 = vld [vmem:[#allocation3 + $0x44] sm:$0xf0]  ;;  %v509_v21 = vld [vmem:[#allocation3 + $0x8] sm:$0xf0]  ;;  %v508_v24 = vor.u32 %v634_v17, %v507_v16 }
  0x14   :  { %v641_v22 = vld [vmem:[#allocation3 + $0x44] sm:$0xf]  ;;  %v541_v23 = vld [vmem:[#allocation3 + $0x48] sm:$0xf0]  ;;  %v540_v25 = vor.u32 %v642_v19, %v539_v18  ;;  %v512_v26 = vor.u32 %v633_v20, %v509_v21  ;;  %v636_v29 = vld [vmem:[#allocation3 + $0x14] sm:$0xf0] }
  0x15   :  { %306 = vmatpush.bf16.msra.mxu0 %v654_v4  ;;  %714 = vmatpush.bf16.msra.mxu2 %v654_v4  ;;  %v544_v27 = vor.u32 %v641_v22, %v541_v23  ;;  %v547_v30 = vld [vmem:[#allocation3 + $0x50] sm:$0xf]  ;;  %v644_v31 = vld [vmem:[#allocation3 + $0x54] sm:$0xf0]  ;;  %v635_v32 = vld [vmem:[#allocation3 + $0x14] sm:$0xf]  ;;  %v516_v36 = vor.u32 %v636_v29, %v515_v28 }
  0x16   :  { %355 = vmatpush.bf16.msra.mxu1 %v662_v5  ;;  %722 = vmatpush.bf16.msra.mxu3 %v662_v5  ;;  %v517_v33 = vld [vmem:[#allocation3 + $0x18] sm:$0xf0]  ;;  %v643_v34 = vld [vmem:[#allocation3 + $0x54] sm:$0xf]  ;;  %v548_v37 = vor.u32 %v644_v31, %v547_v30  ;;  %v523_v40 = vld [vmem:[#allocation3 + $0x20] sm:$0xf] }
  0x17   :  { %v549_v35 = vld [vmem:[#allocation3 + $0x58] sm:$0xf0]  ;;  %v520_v38 = vor.u32 %v635_v32, %v517_v33  ;;  %v638_v41 = vld [vmem:[#allocation3 + $0x24] sm:$0xf0]  ;;  %v555_v42 = vld [vmem:[#allocation3 + $0x60] sm:$0xf] }
  0x18   :  { %v552_v39 = vor.u32 %v643_v34, %v549_v35  ;;  %v646_v43 = vld [vmem:[#allocation3 + $0x64] sm:$0xf0]  ;;  %v637_v44 = vld [vmem:[#allocation3 + $0x24] sm:$0xf]  ;;  %v525_v45 = vld [vmem:[#allocation3 + $0x28] sm:$0xf0]  ;;  %v524_v48 = vor.u32 %v638_v41, %v523_v40 }
  0x19   :  { %307 = vmatpush.bf16.msra.mxu0 %v653_v6  ;;  %715 = vmatpush.bf16.msra.mxu2 %v653_v6  ;;  %v645_v46 = vld [vmem:[#allocation3 + $0x64] sm:$0xf]  ;;  %v557_v47 = vld [vmem:[#allocation3 + $0x68] sm:$0xf0]  ;;  %v556_v49 = vor.u32 %v646_v43, %v555_v42  ;;  %v528_v50 = vor.u32 %v637_v44, %v525_v45  ;;  %v531_v52 = vld [vmem:[#allocation3 + $0x30] sm:$0xf] }
  0x1a   :  { %356 = vmatpush.bf16.msra.mxu1 %v661_v7  ;;  %723 = vmatpush.bf16.msra.mxu3 %v661_v7  ;;  %v560_v51 = vor.u32 %v645_v46, %v557_v47  ;;  %v640_v53 = vld [vmem:[#allocation3 + $0x34] sm:$0xf0]  ;;  %v563_v54 = vld [vmem:[#allocation3 + $0x70] sm:$0xf]  ;;  %v639_v56 = vld [vmem:[#allocation3 + $0x34] sm:$0xf] }
  0x1b   :  { %v648_v55 = vld [vmem:[#allocation3 + $0x74] sm:$0xf0]  ;;  %v533_v57 = vld [vmem:[#allocation3 + $0x38] sm:$0xf0]  ;;  %v647_v58 = vld [vmem:[#allocation3 + $0x74] sm:$0xf]  ;;  %v532_v60 = vor.u32 %v640_v53, %v531_v52 }
  0x1c   :  { %v565_v59 = vld [vmem:[#allocation3 + $0x78] sm:$0xf0]  ;;  %v564_v61 = vor.u32 %v648_v55, %v563_v54  ;;  %v536_v62 = vor.u32 %v639_v56, %v533_v57 }
  0x1d   :  { %308 = vmatpush.bf16.msra.mxu0 %v652_v8  ;;  %716 = vmatpush.bf16.msra.mxu2 %v652_v8  ;;  %v568_v63 = vor.u32 %v647_v58, %v565_v59 }
  0x1e   :  { %357 = vmatpush.bf16.msra.mxu1 %v660_v9  ;;  %724 = vmatpush.bf16.msra.mxu3 %v660_v9 }
  0x21   :  { %309 = vmatpush.bf16.msra.mxu0 %v651_v10  ;;  %717 = vmatpush.bf16.msra.mxu2 %v651_v10 }
  0x22   :  { %358 = vmatpush.bf16.msra.mxu1 %v659_v11  ;;  %725 = vmatpush.bf16.msra.mxu3 %v659_v11 }
  0x25   :  { %310 = vmatpush.bf16.msra.mxu0 %v650_v12  ;;  %718 = vmatpush.bf16.msra.mxu2 %v650_v12 }
  0x26   :  { %359 = vmatpush.bf16.msra.mxu1 %v658_v13  ;;  %726 = vmatpush.bf16.msra.mxu3 %v658_v13 }
  0x29   :  { %311 = vmatpush.bf16.msra.mxu0 %v649_v14  ;;  %719 = vmatpush.bf16.msra.mxu2 %v649_v14 }
  0x2a   :  { %360 = vmatpush.bf16.msra.mxu1 %v657_v15  ;;  %727 = vmatpush.bf16.msra.mxu3 %v657_v15 }
  0x2c   :  { %312 = vmatmul.bf16.vlgmr.msra.gmra.mxu0 %v508_v24  ;;  %332 = vmatmul.bf16.vlgmr.msra.gmra.mxu2 %v540_v25 }
  0x2d   :  { %361 = vmatmul.bf16.vlgmr.msra.gmra.mxu1 %v512_v26  ;;  %381 = vmatmul.bf16.vlgmr.msra.gmra.mxu3 %v544_v27 }
  0x3c   :  { %317 = vmatmul.bf16.gmra.mxu0 %v516_v36  ;;  %337 = vmatmul.bf16.gmra.mxu2 %v548_v37 }
  0x3d   :  { %366 = vmatmul.bf16.gmra.mxu1 %v520_v38  ;;  %386 = vmatmul.bf16.gmra.mxu3 %v552_v39 }
  0x4c   :  { %322 = vmatmul.bf16.gmra.mxu0 %v524_v48  ;;  %342 = vmatmul.bf16.gmra.mxu2 %v556_v49 }
  0x4d   :  { %371 = vmatmul.bf16.gmra.mxu1 %v528_v50  ;;  %391 = vmatmul.bf16.gmra.mxu3 %v560_v51 }
  0x5c   :  { %327 = vmatmul.bf16.gmra.mxu0 %v532_v60  ;;  %347 = vmatmul.bf16.gmra.mxu2 %v564_v61 }
  0x5d   :  { %376 = vmatmul.bf16.gmra.mxu1 %v536_v62  ;;  %396 = vmatmul.bf16.gmra.mxu3 %v568_v63 }
  0xa9   :  { %v313_v0 = vpop.f32.mrf.mxu0 }
  0xaa   :  { %v362_v1 = vpop.f32.mrf.mxu1 }
  0xab   :  { %v363_v6 = vadd.f32 %v362_v1, %v313_v0 }
  0xaf   :  { %v333_v2 = vpop.f32.mrf.mxu2 }
  0xb0   :  { %v382_v3 = vpop.f32.mrf.mxu3 }
  0xb1   :  { %v315_v4 = vpop.f32.mrf.mxu0  ;;  %v383_v11 = vadd.f32 %v382_v3, %v333_v2 }
  0xb2   :  { %v364_v5 = vpop.f32.mrf.mxu1 }
  0xb3   :  { %v365_v7 = vadd.f32 %v364_v5, %v315_v4 }
  0xb5   :  { %v668_v8 = vpack.c.bf16 %v365_v7, %v363_v6 }
  0xb7   :  { %669 = vst [vmem:[#allocation8] sm:$0xff] %v668_v8   ;;  %v335_v9 = vpop.f32.mrf.mxu2 }
  0xb8   :  { %v384_v10 = vpop.f32.mrf.mxu3 }
  0xb9   :  { %v385_v12 = vadd.f32 %v384_v10, %v335_v9  ;;  %v318_v13 = vpop.f32.mrf.mxu0 }
  0xba   :  { %v367_v14 = vpop.f32.mrf.mxu1 }
  0xbb   :  { %v688_v15 = vpack.c.bf16 %v385_v12, %v383_v11  ;;  %v368_v20 = vadd.f32 %v367_v14, %v318_v13 }
  0xbd   :  { %708 = vst [vmem:[#allocation8 + $0x20] sm:$0xff] %v688_v15  }
  0xbf   :  { %v338_v16 = vpop.f32.mrf.mxu2 }
  0xc0   :  { %v387_v17 = vpop.f32.mrf.mxu3 }
  0xc1   :  { %v320_v18 = vpop.f32.mrf.mxu0  ;;  %v388_v25 = vadd.f32 %v387_v17, %v338_v16 }
  0xc2   :  { %v369_v19 = vpop.f32.mrf.mxu1 }
  0xc3   :  { %v370_v21 = vadd.f32 %v369_v19, %v320_v18 }
  0xc5   :  { %v673_v22 = vpack.c.bf16 %v370_v21, %v368_v20 }
  0xc7   :  { %705 = vst [vmem:[#allocation8 + $0x8] sm:$0xff] %v673_v22   ;;  %v340_v23 = vpop.f32.mrf.mxu2 }
  0xc8   :  { %v389_v24 = vpop.f32.mrf.mxu3 }
  0xc9   :  { %v390_v26 = vadd.f32 %v389_v24, %v340_v23  ;;  %v323_v27 = vpop.f32.mrf.mxu0 }
  0xca   :  { %v372_v28 = vpop.f32.mrf.mxu1 }
  0xcb   :  { %v693_v29 = vpack.c.bf16 %v390_v26, %v388_v25  ;;  %v373_v34 = vadd.f32 %v372_v28, %v323_v27 }
  0xcd   :  { %709 = vst [vmem:[#allocation8 + $0x28] sm:$0xff] %v693_v29  }
  0xcf   :  { %v343_v30 = vpop.f32.mrf.mxu2 }
  0xd0   :  { %v392_v31 = vpop.f32.mrf.mxu3 }
  0xd1   :  { %v325_v32 = vpop.f32.mrf.mxu0  ;;  %v393_v39 = vadd.f32 %v392_v31, %v343_v30 }
  0xd2   :  { %v374_v33 = vpop.f32.mrf.mxu1 }
  0xd3   :  { %v375_v35 = vadd.f32 %v374_v33, %v325_v32 }
  0xd5   :  { %v678_v36 = vpack.c.bf16 %v375_v35, %v373_v34 }
  0xd7   :  { %706 = vst [vmem:[#allocation8 + $0x10] sm:$0xff] %v678_v36   ;;  %v345_v37 = vpop.f32.mrf.mxu2 }
  0xd8   :  { %v394_v38 = vpop.f32.mrf.mxu3 }
  0xd9   :  { %v395_v40 = vadd.f32 %v394_v38, %v345_v37  ;;  %v328_v41 = vpop.f32.mrf.mxu0 }
  0xda   :  { %v377_v42 = vpop.f32.mrf.mxu1 }
  0xdb   :  { %v698_v43 = vpack.c.bf16 %v395_v40, %v393_v39  ;;  %v378_v48 = vadd.f32 %v377_v42, %v328_v41 }
  0xdd   :  { %710 = vst [vmem:[#allocation8 + $0x30] sm:$0xff] %v698_v43  }
  0xdf   :  { %v348_v44 = vpop.f32.mrf.mxu2 }
  0xe0   :  { %v397_v45 = vpop.f32.mrf.mxu3 }
  0xe1   :  { %v330_v46 = vpop.f32.mrf.mxu0  ;;  %v398_v53 = vadd.f32 %v397_v45, %v348_v44 }
  0xe2   :  { %v379_v47 = vpop.f32.mrf.mxu1 }
  0xe3   :  { %v380_v49 = vadd.f32 %v379_v47, %v330_v46 }
  0xe5   :  { %v683_v50 = vpack.c.bf16 %v380_v49, %v378_v48 }
  0xe7   :  { %707 = vst [vmem:[#allocation8 + $0x18] sm:$0xff] %v683_v50   ;;  %v350_v51 = vpop.f32.mrf.mxu2 }
  0xe8   :  { %v399_v52 = vpop.f32.mrf.mxu3 }
  0xe9   :  { %v400_v54 = vadd.f32 %v399_v52, %v350_v51 }
  0xeb   :  { %v703_v55 = vpack.c.bf16 %v400_v54, %v398_v53 }
  0xed   :  { %711 = vst [vmem:[#allocation8 + $0x38] sm:$0xff] %v703_v55  }
  0xee   :  { %497 = dma.vmem_to_hbm [thread:$0]  %s490_s1, 1024, %s492_s25, [#allocation5], %s817_s21, %s817_s21, %s818_s22  }
  0xef   :  { %811 = dma.done.wait [#allocation5], 1024  }
  0xf0   :  { %812 = vsyncadd [#allocation5], 4294966272 }
  0xf1   :  { %502 = vsyncpa [#allocation4], 1 }
  0xf2   :  { %503 = vsyncpa [#allocation7], 1 }
  0xf3   :  { %504 = vsyncpa [#allocation5], 1 }

</bundles_post_ra>
